<compile_context>
chip_gen: v7x
topology: tpu7x:2x2x1
jax: 0.10.0
libtpu: 0.0.40
codegen_flags: <defaults>
</compile_context>

<pallas_src>
import jax
import jax.numpy as jnp
from jax import lax
from jax.experimental import pallas as pl
from jax.experimental.pallas import tpu as pltpu

IN_FEATURES = 83
HIDDEN1 = 32
HIDDEN2 = 16
OUT_FEATURES = 8

DEFAULT_BLOCK_B = 8192  # rows per grid step; multiple of 128 (lane axis of the output)


def _round_up(n, m):
    return ((n + m - 1) // m) * m


def _grid_semantics(num_blocks):
    # v7x has 2 TensorCores per chip: CORE_PARALLEL shards the batch grid across them.
    # On single-TC chips (v5e/v6e) "parallel" vs "arbitrary" is a codegen no-op.
    try:
        kind = jax.devices()[0].device_kind.lower()
    except Exception:
        kind = ""
    if num_blocks >= 2 and ("v7" in kind or "7x" in kind):
        return (pltpu.CORE_PARALLEL,)
    return ("parallel",)


def mlp_kernel(x_ref, w1_ref, b1_ref, w2_ref, b2_ref, w3_ref, b3_ref, o_ref):
    # x_ref:  (TB, 83)  in the caller's stored dtype (f32 or bf16)
    # w1_ref: (32, 83), w2_ref: (16, 32), w3_ref: (8, 16)  -- PyTorch-native [out, in], f32
    # b*_ref: (32, 1) / (16, 1) / (8, 1) f32 columns (broadcast along the 128-lane batch axis)
    # o_ref:  (8, TB) f32, lane-dense along the batch axis (unmasked stores)
    x = x_ref[...]
    w1 = w1_ref[...]
    if w1.dtype != x.dtype:
        w1 = w1.astype(x.dtype)  # only taken when x arrives bf16; w1 is tiny (32x83)

    # Layer 1, transposed / lane-dense: h1t[f, b] = sum_k w1[f, k] * x[b, k] -> (32, TB).
    # Same A @ B^T (contract last dims) pattern as the flash-attention q.k^T; f32 accumulate.
    h1t = lax.dot_general(
        w1, x, dimension_numbers=(((1,), (1,)), ((), ())),
        preferred_element_type=jnp.float32)
    h1t = jnp.maximum(h1t + b1_ref[...], 0.0)
    # TODO(synk): PyTorch forward prints h1[:, :10] / h2[:, :10]; pl.debug_print is
    # scalar-only, so the activation-slice prints have no clean in-kernel equivalent.

    # Layer 2: plain (16, 32) @ (32, TB) matmul; stays lane-dense; f32 throughout.
    h2t = jnp.dot(w2_ref[...], h1t, preferred_element_type=jnp.float32)
    h2t = jnp.maximum(h2t + b2_ref[...], 0.0)

    # Layer 3: (8, 16) @ (16, TB) -> (8, TB); column bias broadcast; unmasked store.
    o_ref[...] = (jnp.dot(w3_ref[...], h2t, preferred_element_type=jnp.float32)
                  + b3_ref[...])


def toy_mlp_policy(x, params, *, block_b=None, transposed_output=False):
    """x: (B, 83) in its stored dtype (f32 for exact PyTorch semantics; bf16 also works).

    params (PyTorch-native layouts, f32):
      w1 (32, 83), w2 (16, 32), w3 (8, 16); b1 (32, 1), b2 (16, 1), b3 (8, 1).

    Returns (B, 8) float32, or the kernel-native lane-dense (8, B) when
    transposed_output=True (lets the consumer skip the final transpose pass).
    """
    B = x.shape[0]
    if block_b is None:
        block_b = DEFAULT_BLOCK_B
    # Lane-dense output tile must be a multiple of 128; never larger than needed.
    tb = min(_round_up(block_b, 128), _round_up(max(B, 1), 128))
    num_blocks = pl.cdiv(B, tb)  # ragged last tile handled by Pallas masking (no jnp.pad)

    out_t = pl.pallas_call(
        mlp_kernel,
        out_shape=jax.ShapeDtypeStruct((OUT_FEATURES, B), jnp.float32),
        grid_spec=pltpu.PrefetchScalarGridSpec(
            num_scalar_prefetch=0,
            grid=(num_blocks,),
            in_specs=[
                pl.BlockSpec((tb, IN_FEATURES), lambda i: (i, 0)),          # x tile
                pl.BlockSpec((HIDDEN1, IN_FEATURES), lambda i: (0, 0)),     # w1 (resident)
                pl.BlockSpec((HIDDEN1, 1), lambda i: (0, 0)),               # b1 column
                pl.BlockSpec((HIDDEN2, HIDDEN1), lambda i: (0, 0)),         # w2
                pl.BlockSpec((HIDDEN2, 1), lambda i: (0, 0)),               # b2
                pl.BlockSpec((OUT_FEATURES, HIDDEN2), lambda i: (0, 0)),    # w3
                pl.BlockSpec((OUT_FEATURES, 1), lambda i: (0, 0)),          # b3 column
            ],
            out_specs=pl.BlockSpec((OUT_FEATURES, tb), lambda i: (0, i)),   # lane-dense
        ),
        compiler_params=pltpu.CompilerParams(
            dimension_semantics=_grid_semantics(num_blocks),
        ),
    )(x, params["w1"], params["b1"], params["w2"], params["b2"],
      params["w3"], params["b3"])

    if transposed_output:
        return out_t  # (8, B): kernel-native layout, no extra XLA pass
    # (B, 8) to match the PyTorch module; this is 32 B/row of layout plumbing on the
    # tiny output — pass transposed_output=True to fuse it into the consumer instead.
    return out_t.T


def init_params(key):
    """torch.nn.Linear-style init (U[-1/sqrt(fan_in), +1/sqrt(fan_in)]).

    Weights stored PyTorch-native [out, in]; biases stored as (out, 1) columns so the
    kernel consumes them verbatim (zero wrapper-side transposes/reshapes).
    """
    def linear_init(k, fan_in, fan_out):
        kw, kb = jax.random.split(k)
        bound = 1.0 / jnp.sqrt(float(fan_in))
        w = jax.random.uniform(kw, (fan_out, fan_in), jnp.float32, -bound, bound)
        b = jax.random.uniform(kb, (fan_out, 1), jnp.float32, -bound, bound)
        return w, b

    k1, k2, k3 = jax.random.split(key, 3)
    w1, b1 = linear_init(k1, IN_FEATURES, HIDDEN1)
    w2, b2 = linear_init(k2, HIDDEN1, HIDDEN2)
    w3, b3 = linear_init(k3, HIDDEN2, OUT_FEATURES)
    return {"w1": w1, "b1": b1, "w2": w2, "b2": b2, "w3": w3, "b3": b3}


def reference(x, p):
    """Pure-JAX f32 reference matching the PyTorch module (Linear -> ReLU -> ... )."""
    h1 = jnp.maximum(jnp.dot(x, p["w1"].T, preferred_element_type=jnp.float32)
                     + p["b1"].T, 0.0)
    h2 = jnp.maximum(jnp.dot(h1, p["w2"].T, preferred_element_type=jnp.float32)
                     + p["b2"].T, 0.0)
    return jnp.dot(h2, p["w3"].T, preferred_element_type=jnp.float32) + p["b3"].T


if __name__ == "__main__":
    key = jax.random.PRNGKey(0)
    kx, kp = jax.random.split(key)
    params = init_params(kp)

    # Case 1: original spec shape (batch=1), pure f32 — matches PyTorch semantics.
    x1 = jax.random.uniform(kx, (1, IN_FEATURES), jnp.float32) - 0.5
    out1 = jax.block_until_ready(toy_mlp_policy(x1, params))
    ref1 = reference(x1, params)
    assert out1.shape == (1, OUT_FEATURES)
    assert jnp.allclose(out1, ref1, atol=1e-5, rtol=1e-4)

    # Case 2: ragged batch (500 rows, not a multiple of the 256-row tile): exercises the
    # batch grid and Pallas' masked partial last block (no jnp.pad round trip).
    xb = jax.random.uniform(kx, (500, IN_FEATURES), jnp.float32) - 0.5
    out2 = jax.block_until_ready(toy_mlp_policy(xb, params, block_b=256))
    ref2 = reference(xb, params)
    assert out2.shape == (500, OUT_FEATURES)
    assert jnp.allclose(out2, ref2, atol=1e-5, rtol=1e-4)

    print("KERNEL_OK")
</pallas_src>

<mosaic_0001>
module attributes {stable_mosaic.version = 11 : i64} {
  func.func @mlp_kernel(%arg0: i32, %arg1: memref<128x83xf32, #tpu.memory_space<vmem>>, %arg2: memref<32x83xf32, #tpu.memory_space<vmem>>, %arg3: memref<32x1xf32, #tpu.memory_space<vmem>>, %arg4: memref<16x32xf32, #tpu.memory_space<vmem>>, %arg5: memref<16x1xf32, #tpu.memory_space<vmem>>, %arg6: memref<8x16xf32, #tpu.memory_space<vmem>>, %arg7: memref<8x1xf32, #tpu.memory_space<vmem>>, %arg8: memref<8x128xf32, #tpu.memory_space<vmem>>) attributes {dimension_semantics = [#tpu.dimension_semantics<parallel>], iteration_bounds = array<i64: 1>, scalar_prefetch = 0 : i64, scratch_operands = 0 : i64, tpu.core_type = #tpu.core_type<tc>, window_params = [{transform_indices = @transform_0, window_bounds = array<i64: 128, 83>}, {pipeline_mode = #tpu.pipeline_mode<synchronous>, transform_indices = @transform_1, window_bounds = array<i64: 32, 83>}, {pipeline_mode = #tpu.pipeline_mode<synchronous>, transform_indices = @transform_2, window_bounds = array<i64: 32, 1>}, {pipeline_mode = #tpu.pipeline_mode<synchronous>, transform_indices = @transform_3, window_bounds = array<i64: 16, 32>}, {pipeline_mode = #tpu.pipeline_mode<synchronous>, transform_indices = @transform_4, window_bounds = array<i64: 16, 1>}, {pipeline_mode = #tpu.pipeline_mode<synchronous>, transform_indices = @transform_5, window_bounds = array<i64: 8, 16>}, {pipeline_mode = #tpu.pipeline_mode<synchronous>, transform_indices = @transform_6, window_bounds = array<i64: 8, 1>}, {transform_indices = @transform_7, window_bounds = array<i64: 8, 128>}]} {
    %c0 = arith.constant 0 : index
    %c0_0 = arith.constant 0 : index
    %0 = vector.load %arg1[%c0, %c0_0] : memref<128x83xf32, #tpu.memory_space<vmem>>, vector<128x83xf32>
    %c0_1 = arith.constant 0 : index
    %c0_2 = arith.constant 0 : index
    %1 = vector.load %arg2[%c0_1, %c0_2] : memref<32x83xf32, #tpu.memory_space<vmem>>, vector<32x83xf32>
    %cst = arith.constant dense<0.000000e+00> : vector<32x128xf32>
    %2 = tpu.matmul %1, %0, %cst {dimension_numbers = #tpu.dot_dimension_numbers<[1], [1], [0], [0], [0, 0, 1, 0], [], []>} : vector<32x83xf32>, vector<128x83xf32>, vector<32x128xf32> -> vector<32x128xf32>
    %c0_3 = arith.constant 0 : index
    %c0_4 = arith.constant 0 : index
    %3 = vector.load %arg3[%c0_3, %c0_4] : memref<32x1xf32, #tpu.memory_space<vmem>>, vector<32x1xf32>
    %4 = vector.broadcast %3 : vector<32x1xf32> to vector<32x128xf32>
    %5 = arith.addf %2, %4 : vector<32x128xf32>
    %cst_5 = arith.constant 0.000000e+00 : f32
    %6 = vector.broadcast %cst_5 : f32 to vector<32x128xf32>
    %7 = arith.maximumf %5, %6 : vector<32x128xf32>
    %c0_6 = arith.constant 0 : index
    %c0_7 = arith.constant 0 : index
    %8 = vector.load %arg4[%c0_6, %c0_7] : memref<16x32xf32, #tpu.memory_space<vmem>>, vector<16x32xf32>
    %cst_8 = arith.constant dense<0.000000e+00> : vector<16x128xf32>
    %9 = tpu.matmul %8, %7, %cst_8 {dimension_numbers = #tpu.dot_dimension_numbers<[1], [0], [0], [1], [0, 0, 1, 1], [], []>} : vector<16x32xf32>, vector<32x128xf32>, vector<16x128xf32> -> vector<16x128xf32>
    %c0_9 = arith.constant 0 : index
    %c0_10 = arith.constant 0 : index
    %10 = vector.load %arg5[%c0_9, %c0_10] : memref<16x1xf32, #tpu.memory_space<vmem>>, vector<16x1xf32>
    %11 = vector.broadcast %10 : vector<16x1xf32> to vector<16x128xf32>
    %12 = arith.addf %9, %11 : vector<16x128xf32>
    %cst_11 = arith.constant 0.000000e+00 : f32
    %13 = vector.broadcast %cst_11 : f32 to vector<16x128xf32>
    %14 = arith.maximumf %12, %13 : vector<16x128xf32>
    %c0_12 = arith.constant 0 : index
    %c0_13 = arith.constant 0 : index
    %15 = vector.load %arg6[%c0_12, %c0_13] : memref<8x16xf32, #tpu.memory_space<vmem>>, vector<8x16xf32>
    %cst_14 = arith.constant dense<0.000000e+00> : vector<8x128xf32>
    %16 = tpu.matmul %15, %14, %cst_14 {dimension_numbers = #tpu.dot_dimension_numbers<[1], [0], [0], [1], [0, 0, 1, 1], [], []>} : vector<8x16xf32>, vector<16x128xf32>, vector<8x128xf32> -> vector<8x128xf32>
    %c0_15 = arith.constant 0 : index
    %c0_16 = arith.constant 0 : index
    %17 = vector.load %arg7[%c0_15, %c0_16] : memref<8x1xf32, #tpu.memory_space<vmem>>, vector<8x1xf32>
    %18 = vector.broadcast %17 : vector<8x1xf32> to vector<8x128xf32>
    %19 = arith.addf %16, %18 : vector<8x128xf32>
    %c0_17 = arith.constant 0 : index
    %c0_18 = arith.constant 0 : index
    %20 = vector.load %arg8[%c0_17, %c0_18] : memref<8x128xf32, #tpu.memory_space<vmem>>, vector<8x128xf32>
    tpu.vector_store %arg8[%c0_17, %c0_18], %19 {strides = array<i32>} : memref<8x128xf32, #tpu.memory_space<vmem>>, vector<8x128xf32>,
    return
  }
  func.func @transform_0(%arg0: i32) -> (i32, i32) {
    %c0_i32 = arith.constant 0 : i32
    %c0_i32_0 = arith.constant 0 : i32
    return %arg0, %c0_i32 : i32, i32
  }
  func.func @transform_1(%arg0: i32) -> (i32, i32) {
    %c0_i32 = arith.constant 0 : i32
    %c0_i32_0 = arith.constant 0 : i32
    %c0_i32_1 = arith.constant 0 : i32
    return %c0_i32, %c0_i32_0 : i32, i32
  }
  func.func @transform_2(%arg0: i32) -> (i32, i32) {
    %c0_i32 = arith.constant 0 : i32
    %c0_i32_0 = arith.constant 0 : i32
    %c0_i32_1 = arith.constant 0 : i32
    return %c0_i32, %c0_i32_0 : i32, i32
  }
  func.func @transform_3(%arg0: i32) -> (i32, i32) {
    %c0_i32 = arith.constant 0 : i32
    %c0_i32_0 = arith.constant 0 : i32
    %c0_i32_1 = arith.constant 0 : i32
    return %c0_i32, %c0_i32_0 : i32, i32
  }
  func.func @transform_4(%arg0: i32) -> (i32, i32) {
    %c0_i32 = arith.constant 0 : i32
    %c0_i32_0 = arith.constant 0 : i32
    %c0_i32_1 = arith.constant 0 : i32
    return %c0_i32, %c0_i32_0 : i32, i32
  }
  func.func @transform_5(%arg0: i32) -> (i32, i32) {
    %c0_i32 = arith.constant 0 : i32
    %c0_i32_0 = arith.constant 0 : i32
    %c0_i32_1 = arith.constant 0 : i32
    return %c0_i32, %c0_i32_0 : i32, i32
  }
  func.func @transform_6(%arg0: i32) -> (i32, i32) {
    %c0_i32 = arith.constant 0 : i32
    %c0_i32_0 = arith.constant 0 : i32
    %c0_i32_1 = arith.constant 0 : i32
    return %c0_i32, %c0_i32_0 : i32, i32
  }
  func.func @transform_7(%arg0: i32) -> (i32, i32) {
    %c0_i32 = arith.constant 0 : i32
    %c0_i32_0 = arith.constant 0 : i32
    return %c0_i32, %arg0 : i32, i32
  }
}

</mosaic_0001>

<bundles_post_ra>
// kernel: tpu_custom_call.1
= control target key start
LH: loop header
LB: loop body
LE: loop exit
PB: predicated region body
PF: predicated region fallthrough
CT: control target
= control target key end

     0   :  { %vm70_vm0 = vcmask 678912   ;;  %v577_v3 = vmov 0   ;;  %vm234_vm2 = vcmask 261120   ;;  %v578_v57 = vmov 0.0|0.0   ;;  %s758_s0 = inlined_call_operand.vmem [shape: f32[1,83], index: 0, kind: input, shape index: {}]   ;;  %s759_s1 = inlined_call_operand.vmem [shape: f32[32,83], index: 1, kind: input, shape index: {}]   ;;  %s760_s2 = inlined_call_operand.vmem [shape: f32[32,1], index: 2, kind: input, shape index: {}]   ;;  %s761_s4 = inlined_call_operand.vmem [shape: f32[16,1], index: 4, kind: input, shape index: {}]   ;;  %s762_s6 = inlined_call_operand.vmem [shape: f32[8,1], index: 6, kind: input, shape index: {}]   ;;  %s763_s3 = inlined_call_operand.vmem [shape: f32[16,32], index: 3, kind: input, shape index: {}]   ;;  %s764_s5 = inlined_call_operand.vmem [shape: f32[8,16], index: 5, kind: input, shape index: {}]   ;;  %s765_s7 = inlined_call_operand.vmem [shape: f32[8,1], index: 7, kind: output, shape index: {}]  }
   0x1   :  { %v26_v0 = vld [vmem:[%s758_s0] sm:$0xff]  ;;  %v27_v1 = vld [vmem:[%s758_s0 + $0x8] sm:$0xff]  ;;  %vm629_vm1 = vmpackc.low %vm70_vm0, %vm70_vm0  ;;  %575 = vset.pattern.permute.xlu0 %v577_v3  ;;  %576 = vset.pattern.permute.xlu1 %v577_v3  ;;  %vm579_vm3 = vmmov 0   ;;  %v580_v58 = vmov 0.0   ;;  %vm325_vm4 = vcmask 130048  }
   0x2   :  { %v512_v4 = vpack.c.bf16 %v27_v1, %v26_v0  ;;  %v28_v5 = vld [vmem:[%s758_s0 + $0x10] sm:$0xff]  ;;  %v29_v6 = vld [vmem:[%s758_s0 + $0x18] sm:$0xff]  ;;  %v42_v8 = vld [vmem:[%s759_s1] sm:$0xff] }
   0x3   :  { %v518_v7 = vpack.c.bf16 %v29_v6, %v28_v5  ;;  %v30_v9 = vld [vmem:[%s758_s0 + $0x20] sm:$0xff]  ;;  %v31_v10 = vld [vmem:[%s758_s0 + $0x28] sm:$0xff]  ;;  %488 = vmatprep.mubr.msk.f32.mxu0 %vm70_vm0, %v42_v8  ;;  %v48_v12 = vld [vmem:[%s760_s2 + $0x10] sm:$0xff] }
   0x4   :  { %514 = vmatprep.subr.msk.bf16.mxu0 %vm629_vm1, %v512_v4  ;;  %v46_v11 = vld [vmem:[%s760_s2] sm:$0xff]  ;;  %62 = vperm.xlu1 %576, %v48_v12   ;;  %v524_v13 = vpack.c.bf16 %v31_v10, %v30_v9  ;;  %v47_v14 = vld [vmem:[%s760_s2 + $0x8] sm:$0xff]  ;;  %v49_v15 = vld [vmem:[%s760_s2 + $0x18] sm:$0xff] }
   0x5   :  { %517 = vmatpush3.bf16.xpose.msk.msra.mxu0 %vm629_vm1, %v512_v4  ;;  %52 = vperm.xlu0 %575, %v46_v11   ;;  %v222_v16 = vld [vmem:[%s761_s4] sm:$0xff]  ;;  %v32_v17 = vld [vmem:[%s758_s0 + $0x30] sm:$0xff]  ;;  %v33_v18 = vld [vmem:[%s758_s0 + $0x38] sm:$0xff] }
   0x6   :  { %520 = vmatprep.subr.msk.bf16.mxu0 %vm629_vm1, %v518_v7  ;;  %v223_v19 = vld [vmem:[%s761_s4 + $0x8] sm:$0xff]  ;;  %v530_v20 = vpack.c.bf16 %v33_v18, %v32_v17  ;;  %v319_v21 = vld [vmem:[%s762_s6] sm:$0xff]  ;;  %v36_v25 = vld [vmem:[%s758_s0 + $0x50] sm:$0xff] }
   0x7   :  { %v34_v22 = vld [vmem:[%s758_s0 + $0x40] sm:$0xff]  ;;  %v35_v23 = vld [vmem:[%s758_s0 + $0x48] sm:$0xff]  ;;  %v37_v26 = vld [vmem:[%s758_s0 + $0x58] sm:$0xff] }
   0x8   :  { %67 = vperm.xlu1 %576, %v49_v15   ;;  %v536_v24 = vpack.c.bf16 %v35_v23, %v34_v22  ;;  %v542_v27 = vpack.c.bf16 %v37_v26, %v36_v25  ;;  %v38_v28 = vld [vmem:[%s758_s0 + $0x60] sm:$0xff]  ;;  %v39_v29 = vld [vmem:[%s758_s0 + $0x68] sm:$0xff]  ;;  %v40_v31 = vld [vmem:[%s758_s0 + $0x70] sm:$0xff] }
   0x9   :  { %57 = vperm.xlu0 %575, %v47_v14   ;;  %v548_v30 = vpack.c.bf16 %v39_v29, %v38_v28  ;;  %v41_v32 = vld [vmem:[%s758_s0 + $0x78] sm:$0xff]  ;;  %v43_v34 = vld [vmem:[%s759_s1 + $0x8] sm:$0xff]  ;;  %v44_v35 = vld [vmem:[%s759_s1 + $0x10] sm:$0xff] }
   0xa   :  { %v554_v33 = vpack.c.bf16 %v41_v32, %v40_v31  ;;  %v45_v36 = vld [vmem:[%s759_s1 + $0x18] sm:$0xff]  ;;  %v220_v37 = vld [vmem:[%s763_s3] sm:$0xff]  ;;  %v221_v56 = vld [vmem:[%s763_s3 + $0x8] sm:$0xff] }
   0xb   :  { %502 = vmatprep.mubr.msk.f32.mxu1 %vm234_vm2, %v220_v37  ;;  %v318_v4 = vld [vmem:[%s764_s5] sm:$0xff] }
   0xc   :  { %231 = vperm.xlu1 %576, %v223_v19  }
   0xd   :  { %523 = vmatpush3.bf16.xpose.msk.msra.mxu0 %vm629_vm1, %v518_v7  ;;  %226 = vperm.xlu0 %575, %v222_v16  }
   0xe   :  { %526 = vmatprep.subr.msk.bf16.mxu0 %vm629_vm1, %v524_v13 }
  0x11   :  { %322 = vperm.xlu0 %575, %v319_v21  }
  0x15   :  { %529 = vmatpush3.bf16.xpose.msk.msra.mxu0 %vm629_vm1, %v524_v13 }
  0x16   :  { %532 = vmatprep.subr.msk.bf16.mxu0 %vm629_vm1, %v530_v20 }
  0x1d   :  { %535 = vmatpush3.bf16.xpose.msk.msra.mxu0 %vm629_vm1, %v530_v20 }
  0x1e   :  { %538 = vmatprep.subr.msk.bf16.mxu0 %vm629_vm1, %v536_v24 }
  0x25   :  { %541 = vmatpush3.bf16.xpose.msk.msra.mxu0 %vm629_vm1, %v536_v24 }
  0x26   :  { %544 = vmatprep.subr.msk.bf16.mxu0 %vm629_vm1, %v542_v27 }
  0x2d   :  { %547 = vmatpush3.bf16.xpose.msk.msra.mxu0 %vm629_vm1, %v542_v27 }
  0x2e   :  { %550 = vmatprep.subr.msk.bf16.mxu0 %vm629_vm1, %v548_v30 }
  0x35   :  { %553 = vmatpush3.bf16.xpose.msk.msra.mxu0 %vm629_vm1, %v548_v30 }
  0x36   :  { %556 = vmatprep.subr.msk.bf16.mxu0 %vm629_vm1, %v554_v33 }
  0x3d   :  { %559 = vmatpush3.bf16.xpose.msk.msra.mxu0 %vm629_vm1, %v554_v33 }
  0x44   :  { %489 = vmatmul.mubr.msk.f32.vlgmr.msra.gmra.mrb[0].mxu0 %vm70_vm0, %v43_v34 }
  0x45   :  { %491 = vmatprep.mubr.msk.f32.mxu0 %vm70_vm0, %v44_v35 }
  0x48   :  { %492 = vmatmul.mubr.msk.f32.gmra.mrb[2].mxu0 %vm70_vm0, %v45_v36 }
  0x83   :  { %v63_v39 = vpop.permute.xlu1 %62 }
  0x84   :  { %v53_v38 = vpop.permute.xlu0 %52 }
  0x87   :  { %v68_v46 = vpop.permute.xlu1 %67 }
  0x88   :  { %v58_v40 = vpop.permute.xlu0 %57 }
  0x8b   :  { %v232_v59 = vpop.permute.xlu1 %231 }
  0x8c   :  { %v227_v61 = vpop.permute.xlu0 %226 }
  0x90   :  { %v323_v5 = vpop.permute.xlu0 %322 }
 0x117   :  { %v490_v41 = vpop.f32.mrb[0].mxu0 }
 0x118   :  { %v203_v42 = vadd.f32 %v490_v41, %v58_v40  ;;  %v197_v43 = vpop.f32.mrb[1].mxu0 }
 0x119   :  { %v198_v44 = vadd.f32 %v197_v43, %v53_v38 }
 0x11a   :  { %v217_v45 = vmax.f32 %v203_v42, 0.0 }
 0x11b   :  { %v216_v47 = vmax.f32 %v198_v44, 0.0  ;;  %v493_v48 = vpop.f32.mrb[2].mxu0 }
 0x11c   :  { %v213_v49 = vadd.f32 %v493_v48, %v68_v46  ;;  %v207_v50 = vpop.f32.mrb[3].mxu0 }
 0x11d   :  { %v208_v51 = vadd.f32 %v207_v50, %v63_v39  ;;  %v560_v52 = vpack.c.bf16 %v217_v45, %v216_v47 }
 0x11e   :  { %v219_v53 = vmax.f32 %v213_v49, 0.0 }
 0x11f   :  { %v218_v54 = vmax.f32 %v208_v51, 0.0  ;;  %561 = vmatprep.subr.bf16.mxu1 %v560_v52 }
 0x120   :  { %563 = vmatpush3.bf16.msra.mxu1 %v560_v52 }
 0x121   :  { %v564_v55 = vpack.c.bf16 %v219_v53, %v218_v54 }
 0x123   :  { %565 = vmatprep.subr.bf16.mxu1 %v564_v55 }
 0x124   :  { %567 = vmatpush3.bf16.msra.mxu1 %v564_v55 }
 0x125   :  { %568 = vmatprep.subr.bf16.mxu1 %v578_v57 }
 0x127   :  { %503 = vmatmul.mubr.msk.f32.vlgmr.msra.gmra.mrb[0].mxu1 %vm234_vm2, %v221_v56 }
 0x128   :  { %509 = vmatprep.mubr.msk.f32.mxu1 %vm579_vm3, %v580_v58 }
 0x1fa   :  { %v504_v60 = vpop.f32.mrb[0].mxu1 }
 0x1fb   :  { %v313_v62 = vadd.f32 %v504_v60, %v232_v59  ;;  %v307_v63 = vpop.f32.mrb[1].mxu1 }
 0x1fc   :  { %v308_v0 = vadd.f32 %v307_v63, %v227_v61 }
 0x1fd   :  { %v317_v1 = vmax.f32 %v313_v62, 0.0 }
 0x1fe   :  { %v316_v2 = vmax.f32 %v308_v0, 0.0 }
 0x200   :  { %v569_v3 = vpack.c.bf16 %v317_v1, %v316_v2 }
 0x202   :  { %570 = vmatpush3.bf16.msra.mxu1 %v569_v3 }
 0x205   :  { %510 = vmatmul.mubr.msk.f32.vlgmr.msra.gmra.mrb[2].mxu1 %vm325_vm4, %v318_v4 }
 0x2d8   :  { %v395_v6 = vpop.f32.mrb[2].mxu1 }
 0x2d9   :  { %v396_v7 = vadd.f32 %v395_v6, %v323_v5  ;;  %v511_v8 = vpop.f32.mrb[3].mxu1 }
 0x2db   :  { %399 = vst [vmem:[%s765_s7] sm:$0xff] %v396_v7 }

</bundles_post_ra>
